<compile_context>
chip_gen: v7x
topology: tpu7x:2x2x1
jax: 0.10.0
libtpu: 0.0.40
codegen_flags: <defaults>
</compile_context>

<pallas_src>
import functools

import numpy as np
import jax
import jax.numpy as jnp
from jax.experimental import pallas as pl
from jax.experimental.pallas import tpu as pltpu

QUANTILE = 0.5
MS_WEIGHTS = (1.0, 0.5)          # for scales (1, 2)
LAMBDA_Q = 0.1
LAMBDA_T = 0.05
LAMBDA_M = 0.05
TEMPORAL_ALPHA = 0.1


def _combined_loss_kernel(tab_ref, pred_ref, target_ref, out_ref, *,
                          C, L, c_mse, c_quant, sanitize):
    """One (tb, L) batch block of the lane-dense view -> one weighted partial sum."""
    p = pred_ref[...].astype(jnp.float32)
    t = target_ref[...].astype(jnp.float32)
    if sanitize:
        # torch.nan_to_num(nan=0.0, posinf=1.0, neginf=-1.0) parity
        p = jnp.nan_to_num(p, nan=0.0, posinf=1.0, neginf=-1.0)
        t = jnp.nan_to_num(t, nan=0.0, posinf=1.0, neginf=-1.0)

    # Host-precomputed per-lane constants (coefficients already folded in).
    mask0 = tab_ref[0:1, :]     # 1.0 at feature-0 lanes of real data, else 0
    w_temp = tab_ref[1:2, :]    # c_temp where a valid temporal pair exists, else 0
    w_pool = tab_ref[2:3, :]    # c_pool at even-seq lanes with a valid pooled pair

    d = p - t

    # ---- Quantile (q = 0.5): broadcast feature-0 of each seq step across its
    # group of C lanes with an exact window-of-C roll-accumulate (XLU slot).
    if C == 1:
        p0 = p
    else:
        m0 = p * mask0
        pow_sums = {1: m0}
        span = 1
        while 2 * span <= C:
            pow_sums[2 * span] = pow_sums[span] + pltpu.roll(
                pow_sums[span], shift=span, axis=1)
            span *= 2
        p0, offset, remaining = None, 0, C
        for width in sorted(pow_sums, reverse=True):
            if remaining >= width:
                part = pow_sums[width]
                if offset:
                    part = pltpu.roll(part, shift=offset, axis=1)
                p0 = part if p0 is None else p0 + part
                offset += width
                remaining -= width
    e = t - p0

    # ---- Seq-adjacent view: lane i <- d at lane i + C (cyclic roll, XLU).
    # The wrapped last seq step and zero-padded lanes carry zero weight below.
    d_next = pltpu.roll(d, shift=L - C, axis=1)
    ddiff = d_next - d            # temporal first difference of (pred - target)
    pair = d_next + d             # at even s: d[2k] + d[2k+1]  (scale-2 avg pool)

    tile = (c_mse * (d * d) + c_quant * jnp.abs(e)
            + w_temp * (ddiff * ddiff) + w_pool * (pair * pair))

    # Lane-dense per-block output slab; the wrapper reads [i, 0, 0].
    out_ref[...] = jnp.broadcast_to(jnp.sum(tile), out_ref.shape).astype(jnp.float32)


def _vmem_capacity_bytes():
    try:
        cap = int(pltpu.get_tpu_info().vmem_capacity_bytes)
        if cap > 0:
            return cap
    except Exception:
        pass
    return 64 * 1024 * 1024      # conservative default (v7x per-core VMEM)


def _pick_batch_block(B, L_pad, vmem_cap):
    """Rows per block: large, multiple of 8, and >=2 (prefer >=4) grid steps."""
    # ~1/24 of VMEM per input block: 2 inputs x 2 pipeline buffers plus several
    # live f32 intermediates stay well under a 3/4-of-VMEM scoped limit on
    # every generation (v5e/v6e 128 MiB, v7x 64 MiB).
    per_input_budget = max(vmem_cap // 24, 512 * 1024)
    row_bytes = L_pad * 4                      # size as f32 (conservative for bf16)
    tb = max(8, (per_input_budget // row_bytes) // 8 * 8)
    if B > 8:
        # Keep at least 2 (prefer 4) grid steps so both v7x TensorCores /
        # megacore halves have work under dimension_semantics=("parallel",).
        min_blocks = 4 if B >= 32 else 2
        cap = -(-B // min_blocks)              # ceil(B / min_blocks)
        cap = -(-cap // 8) * 8                 # round up to a multiple of 8
        tb = min(tb, max(8, cap))
    tb = min(tb, -(-B // 8) * 8)               # never exceed padded B
    tb = max(tb, 8)
    nb = -(-B // tb)
    return tb, nb


def combined_loss(pred, target, *, sanitize=True):
    """Forward pass of CombinedLoss (default config) as one Pallas TPU kernel."""
    assert pred.shape == target.shape and pred.ndim == 3
    B, S, C = pred.shape
    assert S >= 4, "default config (scales [1, 2]) needs seq_len >= 4"

    # Fold lambdas, multiscale weights and mean denominators into per-term
    # trace-time coefficients (single weighted accumulation in the kernel).
    w1, w2 = MS_WEIGHTS
    n_all = float(B * S * C)
    n_tmp = float(B * (S - 1) * C)
    n_pool = float(B * (S // 2) * C)
    c_mse = (1.0 + LAMBDA_M * w1 / (w1 + w2)) / n_all
    c_quant = 0.5 * LAMBDA_Q / n_all                      # q = 0.5 specialization
    c_temp = LAMBDA_T * TEMPORAL_ALPHA / n_tmp
    c_pool = 0.25 * LAMBDA_M * (w2 / (w1 + w2)) / n_pool  # pooled diff = 0.5*pair

    # Lane-dense view: (B, S, C) -> (B, S*C) is a free metadata reshape on the
    # contiguous row-major layout.
    L = S * C
    L_pad = -(-L // 128) * 128
    p2 = pred.reshape(B, L)
    t2 = target.reshape(B, L)

    vmem_cap = _vmem_capacity_bytes()
    tb, nb = _pick_batch_block(B, L_pad, vmem_cap)
    B_pad = tb * nb

    # Zero padding (lanes to a 128 multiple, batch rows to tb*nb) contributes
    # exactly 0 to every term (pred == target == 0); denominators use true B/S/C.
    if B_pad != B or L_pad != L:
        p2 = jnp.pad(p2, ((0, B_pad - B), (0, L_pad - L)))
        t2 = jnp.pad(t2, ((0, B_pad - B), (0, L_pad - L)))

    # Per-lane constant tables built on the host: feature-0 mask and the
    # coefficient-folded, validity-masked weights for temporal / pooled terms.
    lane = np.arange(L_pad)
    s_of = lane // C
    tab = np.zeros((8, L_pad), dtype=np.float32)
    tab[0] = np.where((lane < L) & (lane % C == 0), 1.0, 0.0)
    tab[1] = np.where(s_of < (S - 1), c_temp, 0.0)
    tab[2] = np.where((s_of % 2 == 0) & (s_of < 2 * (S // 2)), c_pool, 0.0)
    tables = jnp.asarray(tab)

    kernel = functools.partial(_combined_loss_kernel, C=C, L=L_pad,
                               c_mse=c_mse, c_quant=c_quant, sanitize=sanitize)

    partials = pl.pallas_call(
        kernel,
        out_shape=jax.ShapeDtypeStruct((nb, 8, 128), jnp.float32),
        grid=(nb,),
        in_specs=[
            pl.BlockSpec((8, L_pad), lambda i: (0, 0)),      # constant lane tables
            pl.BlockSpec((tb, L_pad), lambda i: (i, 0)),     # pred (lane-dense)
            pl.BlockSpec((tb, L_pad), lambda i: (i, 0)),     # target (lane-dense)
        ],
        out_specs=pl.BlockSpec((1, 8, 128), lambda i: (i, 0, 0)),
        compiler_params=pltpu.CompilerParams(
            dimension_semantics=("parallel",),
            vmem_limit_bytes=int(min(vmem_cap * 3 // 4, 96 * 1024 * 1024))),
    )(tables, p2, t2)

    return jnp.sum(partials[:, 0, 0])


def reference_loss(pred, target):
    """Pure-JAX reference mirroring the PyTorch forward (default config)."""
    p = jnp.nan_to_num(pred.astype(jnp.float32), nan=0.0, posinf=1.0, neginf=-1.0)
    t = jnp.nan_to_num(target.astype(jnp.float32), nan=0.0, posinf=1.0, neginf=-1.0)
    mse = jnp.mean((p - t) ** 2)
    e = t - p[:, :, 0:1]
    quantile = jnp.mean(jnp.maximum((QUANTILE - 1.0) * e, QUANTILE * e))
    pd = p[:, 1:] - p[:, :-1]
    td = t[:, 1:] - t[:, :-1]
    temporal = TEMPORAL_ALPHA * jnp.mean((pd - td) ** 2)
    B, S, C = p.shape
    S2 = S // 2
    pp = p[:, : 2 * S2].reshape(B, S2, 2, C).mean(axis=2)
    tp = t[:, : 2 * S2].reshape(B, S2, 2, C).mean(axis=2)
    mse2 = jnp.mean((pp - tp) ** 2)
    w1, w2 = MS_WEIGHTS
    multiscale = (w1 * mse + w2 * mse2) / (w1 + w2)
    return mse + LAMBDA_Q * quantile + LAMBDA_T * temporal + LAMBDA_M * multiscale


if __name__ == "__main__":
    key = jax.random.PRNGKey(0)
    kp, kt = jax.random.split(key)
    B, S, C = 2, 8, 4
    preds = jax.random.normal(kp, (B, S, C), dtype=jnp.float32)
    target = jax.random.normal(kt, (B, S, C), dtype=jnp.float32)

    loss = combined_loss(preds, target)
    jax.block_until_ready(loss)

    ref = reference_loss(preds, target)
    assert jnp.allclose(loss, ref, rtol=1e-5, atol=1e-6), (loss, ref)
    print("KERNEL_OK")
</pallas_src>

<mosaic_0001>
module attributes {stable_mosaic.version = 11 : i64} {
  func.func @_combined_loss_kernel(%arg0: i32, %arg1: memref<8x128xf32, #tpu.memory_space<vmem>>, %arg2: memref<8x128xf32, #tpu.memory_space<vmem>>, %arg3: memref<8x128xf32, #tpu.memory_space<vmem>>, %arg4: memref<1x8x128xf32, #tpu.memory_space<vmem>>) attributes {dimension_semantics = [#tpu.dimension_semantics<parallel>], iteration_bounds = array<i64: 1>, scalar_prefetch = 0 : i64, scratch_operands = 0 : i64, tpu.core_type = #tpu.core_type<tc>, window_params = [{pipeline_mode = #tpu.pipeline_mode<synchronous>, transform_indices = @transform_0, window_bounds = array<i64: 8, 128>}, {transform_indices = @transform_1, window_bounds = array<i64: 8, 128>}, {transform_indices = @transform_2, window_bounds = array<i64: 8, 128>}, {transform_indices = @transform_3, window_bounds = array<i64: 1, 8, 128>}]} {
    %c0 = arith.constant 0 : index
    %c0_0 = arith.constant 0 : index
    %0 = vector.load %arg2[%c0, %c0_0] : memref<8x128xf32, #tpu.memory_space<vmem>>, vector<8x128xf32>
    %c0_1 = arith.constant 0 : index
    %c0_2 = arith.constant 0 : index
    %1 = vector.load %arg3[%c0_1, %c0_2] : memref<8x128xf32, #tpu.memory_space<vmem>>, vector<8x128xf32>
    %cst = arith.constant 0.000000e+00 : f32
    %cst_3 = arith.constant -1.000000e+00 : f32
    %cst_4 = arith.constant 1.000000e+00 : f32
    %2 = arith.cmpf one, %0, %0 : vector<8x128xf32>
    %3 = vector.broadcast %cst : f32 to vector<8x128xf32>
    %4 = arith.select %2, %3, %0 : vector<8x128xi1>, vector<8x128xf32>
    %cst_5 = arith.constant 0x7F800000 : f32
    %5 = vector.broadcast %cst_5 : f32 to vector<8x128xf32>
    %6 = arith.cmpf oeq, %4, %5 : vector<8x128xf32>
    %7 = vector.broadcast %cst_4 : f32 to vector<8x128xf32>
    %8 = arith.select %6, %7, %4 : vector<8x128xi1>, vector<8x128xf32>
    %cst_6 = arith.constant 0xFF800000 : f32
    %9 = vector.broadcast %cst_6 : f32 to vector<8x128xf32>
    %10 = arith.cmpf oeq, %8, %9 : vector<8x128xf32>
    %11 = vector.broadcast %cst_3 : f32 to vector<8x128xf32>
    %12 = arith.select %10, %11, %8 : vector<8x128xi1>, vector<8x128xf32>
    %cst_7 = arith.constant 0.000000e+00 : f32
    %cst_8 = arith.constant -1.000000e+00 : f32
    %cst_9 = arith.constant 1.000000e+00 : f32
    %13 = arith.cmpf one, %1, %1 : vector<8x128xf32>
    %14 = vector.broadcast %cst_7 : f32 to vector<8x128xf32>
    %15 = arith.select %13, %14, %1 : vector<8x128xi1>, vector<8x128xf32>
    %cst_10 = arith.constant 0x7F800000 : f32
    %16 = vector.broadcast %cst_10 : f32 to vector<8x128xf32>
    %17 = arith.cmpf oeq, %15, %16 : vector<8x128xf32>
    %18 = vector.broadcast %cst_9 : f32 to vector<8x128xf32>
    %19 = arith.select %17, %18, %15 : vector<8x128xi1>, vector<8x128xf32>
    %cst_11 = arith.constant 0xFF800000 : f32
    %20 = vector.broadcast %cst_11 : f32 to vector<8x128xf32>
    %21 = arith.cmpf oeq, %19, %20 : vector<8x128xf32>
    %22 = vector.broadcast %cst_8 : f32 to vector<8x128xf32>
    %23 = arith.select %21, %22, %19 : vector<8x128xi1>, vector<8x128xf32>
    %c0_12 = arith.constant 0 : index
    %c0_13 = arith.constant 0 : index
    %24 = vector.load %arg1[%c0_12, %c0_13] : memref<8x128xf32, #tpu.memory_space<vmem>>, vector<1x128xf32>
    %c1 = arith.constant 1 : index
    %c0_14 = arith.constant 0 : index
    %25 = vector.load %arg1[%c1, %c0_14] : memref<8x128xf32, #tpu.memory_space<vmem>>, vector<1x128xf32>
    %c2 = arith.constant 2 : index
    %c0_15 = arith.constant 0 : index
    %26 = vector.load %arg1[%c2, %c0_15] : memref<8x128xf32, #tpu.memory_space<vmem>>, vector<1x128xf32>
    %27 = arith.subf %12, %23 : vector<8x128xf32>
    %28 = vector.broadcast %24 : vector<1x128xf32> to vector<8x128xf32>
    %29 = arith.mulf %12, %28 : vector<8x128xf32>
    %c1_i32 = arith.constant 1 : i32
    %30 = tpu.dynamic_rotate %29 by %c1_i32 dim 1 : vector<8x128xf32>, i32 -> vector<8x128xf32>
    %31 = arith.addf %29, %30 : vector<8x128xf32>
    %c2_i32 = arith.constant 2 : i32
    %32 = tpu.dynamic_rotate %31 by %c2_i32 dim 1 : vector<8x128xf32>, i32 -> vector<8x128xf32>
    %33 = arith.addf %31, %32 : vector<8x128xf32>
    %34 = arith.subf %23, %33 : vector<8x128xf32>
    %c124_i32 = arith.constant 124 : i32
    %35 = tpu.dynamic_rotate %27 by %c124_i32 dim 1 : vector<8x128xf32>, i32 -> vector<8x128xf32>
    %36 = arith.subf %35, %27 : vector<8x128xf32>
    %37 = arith.addf %35, %27 : vector<8x128xf32>
    %38 = arith.mulf %27, %27 : vector<8x128xf32>
    %cst_16 = arith.constant 0.0161458328 : f32
    %39 = vector.broadcast %cst_16 : f32 to vector<8x128xf32>
    %40 = arith.mulf %39, %38 : vector<8x128xf32>
    %41 = math.absf %34 : vector<8x128xf32>
    %cst_17 = arith.constant 7.812500e-04 : f32
    %42 = vector.broadcast %cst_17 : f32 to vector<8x128xf32>
    %43 = arith.mulf %42, %41 : vector<8x128xf32>
    %44 = arith.addf %40, %43 : vector<8x128xf32>
    %45 = arith.mulf %36, %36 : vector<8x128xf32>
    %46 = vector.broadcast %25 : vector<1x128xf32> to vector<8x128xf32>
    %47 = arith.mulf %46, %45 : vector<8x128xf32>
    %48 = arith.addf %44, %47 : vector<8x128xf32>
    %49 = arith.mulf %37, %37 : vector<8x128xf32>
    %50 = vector.broadcast %26 : vector<1x128xf32> to vector<8x128xf32>
    %51 = arith.mulf %50, %49 : vector<8x128xf32>
    %52 = arith.addf %48, %51 : vector<8x128xf32>
    %53 = vector.shape_cast %52 : vector<8x128xf32> to vector<1x8x128xf32>
    %cst_18 = arith.constant dense<0.000000e+00> : vector<1xf32>
    %54 = vector.multi_reduction <add>, %53, %cst_18 [1, 2] : vector<1x8x128xf32> to vector<1xf32>
    %55 = vector.shape_cast %54 : vector<1xf32> to vector<1x1x1xf32>
    %56 = vector.extract %55[0, 0, 0] : f32 from vector<1x1x1xf32>
    %57 = vector.broadcast %56 : f32 to vector<1x8x128xf32>
    %c0_19 = arith.constant 0 : index
    %c0_20 = arith.constant 0 : index
    %c0_21 = arith.constant 0 : index
    %58 = vector.load %arg4[%c0_19, %c0_20, %c0_21] : memref<1x8x128xf32, #tpu.memory_space<vmem>>, vector<1x8x128xf32>
    tpu.vector_store %arg4[%c0_19, %c0_20, %c0_21], %57 {strides = array<i32>} : memref<1x8x128xf32, #tpu.memory_space<vmem>>, vector<1x8x128xf32>,
    return
  }
  func.func @transform_0(%arg0: i32) -> (i32, i32) {
    %c0_i32 = arith.constant 0 : i32
    %c0_i32_0 = arith.constant 0 : i32
    %c0_i32_1 = arith.constant 0 : i32
    return %c0_i32, %c0_i32_0 : i32, i32
  }
  func.func @transform_1(%arg0: i32) -> (i32, i32) {
    %c0_i32 = arith.constant 0 : i32
    %c0_i32_0 = arith.constant 0 : i32
    return %arg0, %c0_i32 : i32, i32
  }
  func.func @transform_2(%arg0: i32) -> (i32, i32) {
    %c0_i32 = arith.constant 0 : i32
    %c0_i32_0 = arith.constant 0 : i32
    return %arg0, %c0_i32 : i32, i32
  }
  func.func @transform_3(%arg0: i32) -> (i32, i32, i32) {
    %c0_i32 = arith.constant 0 : i32
    %c0_i32_0 = arith.constant 0 : i32
    %c0_i32_1 = arith.constant 0 : i32
    return %arg0, %c0_i32, %c0_i32_0 : i32, i32, i32
  }
}

</mosaic_0001>

<bundles_post_ra>
// kernel: tpu_custom_call.1
= control target key start
LH: loop header
LB: loop body
LE: loop exit
PB: predicated region body
PF: predicated region fallthrough
CT: control target
= control target key end

     0   :  { %8 = vsyncpa [#allocation3], 0  ;;  %s311_s0 = inlined_call_operand.hbm [shape: f32[8,128], index: 0, kind: input, shape index: {}]   ;;  %s312_s1 = inlined_call_operand.hbm [shape: f32[8,128], index: 1, kind: input, shape index: {}]   ;;  %s313_s2 = inlined_call_operand.hbm [shape: f32[8,128], index: 2, kind: input, shape index: {}]   ;;  %s314_s3 = inlined_call_operand.hbm [shape: f32[1,8,128], index: 3, kind: output, shape index: {}]  }
   0x1   :  { %9 = vsyncpa [#allocation6], 0 }
   0x2   :  { %10 = vsyncpa [#allocation4], 0  ;;  %s236_s12 = smov [#allocation5]   ;;  %s237_s14 = smov [#allocation2]  }
   0x3   :  { %s27_s13 = sshll.u32 %s236_s12, 4  ;;  %s17_s15 = sshll.u32 %s237_s14, 4  ;;  %s28_s13 = int_to_ptr.vmem [resolvable:$true] %s27_s13  ;;  %s18_s15 = int_to_ptr.vmem [resolvable:$true] %s17_s15 }
   0x4   :  { %s142_s18 = scalar_lea.hbm %s312_s1, 128 }
   0x5   :  { %p143_p0 = scmp.ne.s32.totalorder %s312_s1, %s142_s18  ;;  %p146_p1 = scmp.lt.u32.totalorder %s142_s18, %s312_s1 }
   0x7   :  { %p148_p2 = pnand %p146_p1, %p143_p0 }
   0x9   :  { %151 = shalt.err (!%p148_p2)
}
   0xa   :  { %s152_s23 = scalar_lea.vmem %s28_s13, 128  ;;  %p157_p4 = scmp.lt.s32.totalorder %s28_s13, %s28_s13 }
   0xb   :  { %p153_p3 = scmp.ne.s32.totalorder %s28_s13, %s152_s23  ;;  %p158_p5 = scmp.lt.s32.totalorder %s152_s23, %s152_s23 }
   0xd   :  { %p159_p6 = por %p158_p5, %p157_p4 }
   0xf   :  { %p160_p7 = pnand %p159_p6, %p153_p3 }
  0x11   :  { %163 = shalt.err (!%p160_p7)
}
  0x12   :  { %30 = dma.hbm_to_vmem [thread:$0]  %s312_s1, 128, %s28_s13, [#allocation6]  }
  0x13   :  { %s164_s28 = scalar_lea.hbm %s311_s0, 128 }
  0x14   :  { %p165_p8 = scmp.ne.s32.totalorder %s311_s0, %s164_s28  ;;  %p168_p9 = scmp.lt.u32.totalorder %s164_s28, %s311_s0 }
  0x16   :  { %p170_p10 = pnand %p168_p9, %p165_p8 }
  0x18   :  { %173 = shalt.err (!%p170_p10)
}
  0x19   :  { %s174_s6 = scalar_lea.vmem %s18_s15, 128  ;;  %p179_p12 = scmp.lt.s32.totalorder %s18_s15, %s18_s15 }
  0x1a   :  { %p175_p11 = scmp.ne.s32.totalorder %s18_s15, %s174_s6  ;;  %p180_p13 = scmp.lt.s32.totalorder %s174_s6, %s174_s6 }
  0x1c   :  { %p181_p0 = por %p180_p13, %p179_p12 }
  0x1e   :  { %p182_p1 = pnand %p181_p0, %p175_p11 }
  0x20   :  { %185 = shalt.err (!%p182_p1)
}
  0x21   :  { %20 = dma.hbm_to_vmem [thread:$0]  %s311_s0, 128, %s18_s15, [#allocation3]  }
  0x22   :  { %s238_s8 = smov [#allocation7]   ;;  %s186_s12 = scalar_lea.hbm %s313_s2, 128 }
  0x23   :  { %s37_s9 = sshll.u32 %s238_s8, 4  ;;  %p187_p2 = scmp.ne.s32.totalorder %s313_s2, %s186_s12  ;;  %s38_s9 = int_to_ptr.vmem [resolvable:$true] %s37_s9 }
  0x24   :  { %p190_p3 = scmp.lt.u32.totalorder %s186_s12, %s313_s2 }
  0x26   :  { %p192_p4 = pnand %p190_p3, %p187_p2 }
  0x28   :  { %195 = shalt.err (!%p192_p4)
}
  0x29   :  { %s196_s18 = scalar_lea.vmem %s38_s9, 128  ;;  %p201_p6 = scmp.lt.s32.totalorder %s38_s9, %s38_s9 }
  0x2a   :  { %p197_p5 = scmp.ne.s32.totalorder %s38_s9, %s196_s18  ;;  %p202_p7 = scmp.lt.s32.totalorder %s196_s18, %s196_s18 }
  0x2c   :  { %p203_p8 = por %p202_p7, %p201_p6 }
  0x2e   :  { %p204_p9 = pnand %p203_p8, %p197_p5 }
  0x30   :  { %207 = shalt.err (!%p204_p9)
}
  0x31   :  { %40 = dma.hbm_to_vmem [thread:$0]  %s313_s2, 128, %s38_s9, [#allocation6]  }
  0x32   :  { %230 = dma.done.wait [#allocation3], 128  }
  0x33   :  { %231 = vsyncadd [#allocation3], 4294967168 }
  0x34   :  { %232 = dma.done.wait [#allocation6], 256  }
  0x35   :  { %233 = vsyncadd [#allocation6], 4294967040  ;;  %v50_v0 = vld [vmem:[#allocation5] sm:$0xff]  ;;  %v51_v1 = vld [vmem:[#allocation7] sm:$0xff]  ;;  %s239_s2 = smov 1   ;;  %s240_s19 = smov 124  }
  0x36   :  { %vm52_vm0 = vcmp.ne.f32.partialorder %v50_v0, %v50_v0  ;;  %vm58_vm1 = vcmp.ne.f32.partialorder %v51_v1, %v51_v1  ;;  %v130_v6 = vld [vmem:[#allocation2] ss:$0 sm:$0xff]  ;;  %s241_s20 = smov 2   ;;  %v131_v21 = vld [vmem:[#allocation2 + $0x1] ss:$0 sm:$0xff]  ;;  %s242_s21 = smov [#allocation8]  }
  0x37   :  { %v53_v2 = vsel %vm52_vm0, 0.0, %v50_v0  ;;  %v59_v3 = vsel %vm58_vm1, 0.0, %v51_v1  ;;  %v132_v27 = vld [vmem:[#allocation2 + $0x2] ss:$0 sm:$0xff]  ;;  %s120_s22 = sshll.u32 %s242_s21, 4  ;;  %s121_s22 = int_to_ptr.vmem [resolvable:$true] %s120_s22 }
  0x38   :  { %vm54_vm2 = vcmp.eq.f32.partialorder %v53_v2, inf  ;;  %vm60_vm3 = vcmp.eq.f32.partialorder %v59_v3, inf  ;;  %s208_s24 = scalar_lea.vmem %s121_s22, 128  ;;  %p213_p11 = scmp.lt.s32.totalorder %s121_s22, %s121_s22 }
  0x39   :  { %v55_v4 = vsel %vm54_vm2, 1.0, %v53_v2  ;;  %v61_v5 = vsel %vm60_vm3, 1.0, %v59_v3  ;;  %p209_p10 = scmp.ne.s32.totalorder %s121_s22, %s208_s24  ;;  %p214_p12 = scmp.lt.s32.totalorder %s208_s24, %s208_s24 }
  0x3a   :  { %vm56_vm4 = vcmp.eq.f32.partialorder %v55_v4, -inf  ;;  %vm62_vm5 = vcmp.eq.f32.partialorder %v61_v5, -inf }
  0x3b   :  { %v57_v7 = vsel %vm56_vm4, -1.0, %v55_v4  ;;  %v63_v8 = vsel %vm62_vm5, -1.0, %v61_v5  ;;  %p215_p13 = por %p214_p12, %p213_p11 }
  0x3c   :  { %v72_v9 = vmul.f32 %v130_v6, %v57_v7  ;;  %v67_v10 = vsub.f32 %v57_v7, %v63_v8 }
  0x3d   :  { %p216_p0 = pnand %p215_p13, %p209_p10 }
  0x3e   :  { %73 = vrot.lane.b32.xlu0 %v72_v9, %s239_s2  ;;  %80 = vrot.lane.b32.xlu1 %v67_v10, %s240_s19  ;;  %v84_v17 = vmul.f32 %v67_v10, %v67_v10 }
  0x40   :  { %v85_v23 = vmul.f32 0.016145833, %v84_v17 }
  0xb0   :  { %v74_v11 = vpop.permute.xlu0 %73  ;;  %v81_v13 = vpop.permute.xlu1 %80 }
  0xb1   :  { %v75_v12 = vadd.f32 %v74_v11, %v72_v9  ;;  %v82_v14 = vsub.f32 %v81_v13, %v67_v10  ;;  %v83_v19 = vadd.f32 %v81_v13, %v67_v10 }
  0xb3   :  { %76 = vrot.lane.b32.xlu0 %v75_v12, %s241_s20  ;;  %v89_v20 = vmul.f32 %v82_v14, %v82_v14  ;;  %v96_v26 = vmul.f32 %v83_v19, %v83_v19 }
  0xb5   :  { %v94_v25 = vmul.f32 %v131_v21, %v89_v20  ;;  %v101_v30 = vmul.f32 %v132_v27, %v96_v26 }
 0x125   :  { %v77_v15 = vpop.permute.xlu0 %76 }
 0x126   :  { %v78_v16 = vadd.f32 %v77_v15, %v75_v12 }
 0x128   :  { %v79_v18 = vsub.f32 %v63_v8, %v78_v16 }
 0x12a   :  { %v86_v22 = vand.u32 2147483647, %v79_v18 }
 0x12c   :  { %v87_v24 = vmul.f32 0.00078125, %v86_v22 }
 0x12e   :  { %v88_v28 = vadd.f32 %v87_v24, %v85_v23 }
 0x130   :  { %v95_v29 = vadd.f32 %v94_v25, %v88_v28 }
 0x132   :  { %v102_v31 = vadd.f32 %v101_v30, %v95_v29 }
 0x134   :  { %103 = vadd.xlane.f32.xlu1 %v102_v31 }
 0x1c1   :  { %v104_v32 = vpop.xlane.xlu1 %103 }
 0x1c2   :  { %v105_v33 = vrot.slane %v104_v32, 4 }
 0x1c4   :  { %v106_v34 = vadd.f32 %v105_v33, %v104_v32 }
 0x1c6   :  { %v107_v35 = vrot.slane %v106_v34, 2 }
 0x1c8   :  { %v108_v36 = vadd.f32 %v107_v35, %v106_v34 }
 0x1ca   :  { %v109_v37 = vrot.slane %v108_v36, 1 }
 0x1cc   :  { %v110_v38 = vadd.f32 %v109_v37, %v108_v36 }
 0x1ce   :  { %133 = vpush %v110_v38 }
 0x1ff   :  { %s134_s23 = spop %133 }
 0x200   :  { %v112_v39 = vstv %s134_s23 }
 0x201   :  { %113 = vst [vmem:[#allocation8] sm:$0xff] %v112_v39 }
 0x202   :  { %219 = shalt.err (!%p216_p0)
}
 0x203   :  { %s220_s27 = scalar_lea.hbm %s314_s3, 128 }
 0x204   :  { %p221_p1 = scmp.ne.s32.totalorder %s314_s3, %s220_s27  ;;  %p224_p2 = scmp.lt.u32.totalorder %s220_s27, %s314_s3 }
 0x206   :  { %p226_p3 = pnand %p224_p2, %p221_p1 }
 0x208   :  { %229 = shalt.err (!%p226_p3)
}
 0x209   :  { %123 = dma.vmem_to_hbm [thread:$0]  %s121_s22, 128, %s314_s3, [#allocation4]  }
 0x20a   :  { %234 = dma.done.wait [#allocation4], 128  }
 0x20b   :  { %235 = vsyncadd [#allocation4], 4294967168 }
 0x20c   :  { %127 = vsyncpa [#allocation3], 1 }
 0x20d   :  { %128 = vsyncpa [#allocation6], 1 }
 0x20e   :  { %129 = vsyncpa [#allocation4], 1 }

</bundles_post_ra>
